<compile_context>
chip_gen: v5e
topology: v5e:2x2
jax: 0.10.0
libtpu: 0.0.40
codegen_flags: <defaults>
</compile_context>

<pallas_src>
import jax
import jax.numpy as jnp
from jax.experimental import pallas as pl
from jax.experimental.pallas import tpu as pltpu

IN_DIM, HID_DIM, OUT_DIM = 2, 128, 3


def policy_kernel(x_ref, w1_ref, b1_ref, w2_ref, b2_ref, o_ref):
    x = x_ref[...]                                   # (Bt, 2)
    w1 = w1_ref[...]                                 # (2, 128)

    # Layer 1 as two VPU broadcast-FMAs (K=2 is far too shallow for the MXU).
    h = x[:, 0:1] * w1[0:1, :] + x[:, 1:2] * w1[1:2, :] + b1_ref[...]   # (Bt, 128)
    h = jnp.maximum(h, 0.0)                          # ReLU

    # Layer 2 on the MXU (K=128).
    z = jnp.dot(h, w2_ref[...], preferred_element_type=jnp.float32) + b2_ref[...]  # (Bt, 3)

    # Sigmoid: exp goes to the EUP; approx reciprocal also goes to the EUP.
    o_ref[...] = pl.reciprocal(1.0 + jnp.exp(-z), approx=True).astype(o_ref.dtype)


def _cost_estimate(batch):
    flops = 2 * batch * (IN_DIM * HID_DIM + HID_DIM * OUT_DIM)
    transcendentals = 2 * batch * OUT_DIM  # exp + reciprocal per output element
    bytes_accessed = 4 * (
        batch * (IN_DIM + OUT_DIM)
        + IN_DIM * HID_DIM + HID_DIM + HID_DIM * OUT_DIM + OUT_DIM
    )
    return pl.CostEstimate(
        flops=flops, transcendentals=transcendentals, bytes_accessed=bytes_accessed
    )


def policy_forward(x, w1, b1, w2, b2, *, batch_tile=256):
    B = x.shape[0]
    out_dim = w2.shape[1]
    cost = _cost_estimate(B)

    if B <= batch_tile:
        # Small batch: single invocation, whole arrays as VMEM blocks, no grid/pipeline.
        vmem = pl.BlockSpec(memory_space=pltpu.MemorySpace.VMEM)
        return pl.pallas_call(
            policy_kernel,
            out_shape=jax.ShapeDtypeStruct((B, out_dim), jnp.float32),
            in_specs=[vmem, vmem, vmem, vmem, vmem],
            out_specs=vmem,
            cost_estimate=cost,
        )(x, w1, b1, w2, b2)

    # Large batch: tile the batch dim. Weights use constant index_maps so they are
    # DMA'd once and stay VMEM-resident; batch axis is "parallel" for megacore (v7x).
    n_tiles = pl.cdiv(B, batch_tile)
    B_pad = n_tiles * batch_tile
    x_p = x if B_pad == B else jnp.pad(x, ((0, B_pad - B), (0, 0)))
    # TODO(synk): for very large batches a feature-major (out_dim, batch) layout would
    # make the output lane-dense (last dim multiple of 128) and speed up the writeback.
    out = pl.pallas_call(
        policy_kernel,
        out_shape=jax.ShapeDtypeStruct((B_pad, out_dim), jnp.float32),
        grid_spec=pltpu.PrefetchScalarGridSpec(
            num_scalar_prefetch=0,
            grid=(n_tiles,),
            in_specs=[
                pl.BlockSpec((batch_tile, IN_DIM), lambda i: (i, 0)),
                pl.BlockSpec(w1.shape, lambda i: (0, 0)),
                pl.BlockSpec(b1.shape, lambda i: (0, 0)),
                pl.BlockSpec(w2.shape, lambda i: (0, 0)),
                pl.BlockSpec(b2.shape, lambda i: (0, 0)),
            ],
            out_specs=pl.BlockSpec((batch_tile, out_dim), lambda i: (i, 0)),
        ),
        compiler_params=pltpu.CompilerParams(dimension_semantics=("parallel",)),
        cost_estimate=cost,
    )(x_p, w1, b1, w2, b2)
    return out[:B]


def init_params(key):
    # Deterministic init mimicking PyTorch nn.Linear default:
    # uniform(-1/sqrt(fan_in), 1/sqrt(fan_in)) for both weight and bias.
    k1, k2, k3, k4 = jax.random.split(key, 4)
    lim1 = 1.0 / jnp.sqrt(jnp.float32(IN_DIM))
    lim2 = 1.0 / jnp.sqrt(jnp.float32(HID_DIM))
    # stored as (in, out) = transpose of PyTorch's (out, in)
    w1 = jax.random.uniform(k1, (IN_DIM, HID_DIM), jnp.float32, -lim1, lim1)
    b1 = jax.random.uniform(k2, (1, HID_DIM), jnp.float32, -lim1, lim1)
    w2 = jax.random.uniform(k3, (HID_DIM, OUT_DIM), jnp.float32, -lim2, lim2)
    b2 = jax.random.uniform(k4, (1, OUT_DIM), jnp.float32, -lim2, lim2)
    return w1, b1, w2, b2


def reference_forward(x, w1, b1, w2, b2):
    h = jnp.maximum(x @ w1 + b1, 0.0)
    return jax.nn.sigmoid(h @ w2 + b2)


if __name__ == "__main__":
    key = jax.random.PRNGKey(0)
    kx, kp, kx2 = jax.random.split(key, 3)

    w1, b1, w2, b2 = init_params(kp)

    # MountainCar observation: (position, velocity) -> shape (batch, 2)
    # 1) Small-batch (gridless, whole-array VMEM) path.
    x_small = jax.random.normal(kx, (8, IN_DIM), jnp.float32)
    out_small = jax.block_until_ready(policy_forward(x_small, w1, b1, w2, b2))
    ref_small = reference_forward(x_small, w1, b1, w2, b2)
    assert out_small.shape == (8, OUT_DIM)
    assert jnp.allclose(out_small, ref_small, atol=2e-3, rtol=2e-3), "small-batch mismatch"

    # 2) Batched path: many env evaluations fused into one launch (tiled + parallel grid).
    x_big = jax.random.normal(kx2, (1000, IN_DIM), jnp.float32)  # non-multiple of tile: exercises padding
    out_big = jax.block_until_ready(policy_forward(x_big, w1, b1, w2, b2, batch_tile=256))
    ref_big = reference_forward(x_big, w1, b1, w2, b2)
    assert out_big.shape == (1000, OUT_DIM)
    assert jnp.allclose(out_big, ref_big, atol=2e-3, rtol=2e-3), "batched mismatch"

    print("KERNEL_OK")
</pallas_src>

<mosaic_0001>
module attributes {stable_mosaic.version = 11 : i64} {
  func.func @policy_kernel(%arg0: memref<8x2xf32, #tpu.memory_space<vmem>>, %arg1: memref<2x128xf32, #tpu.memory_space<vmem>>, %arg2: memref<1x128xf32, #tpu.memory_space<vmem>>, %arg3: memref<128x3xf32, #tpu.memory_space<vmem>>, %arg4: memref<1x3xf32, #tpu.memory_space<vmem>>, %arg5: memref<8x3xf32, #tpu.memory_space<vmem>>) attributes {dimension_semantics = [], scalar_prefetch = 0 : i64, scratch_operands = 0 : i64, tpu.core_type = #tpu.core_type<tc>} {
    %c0 = arith.constant 0 : index
    %c0_0 = arith.constant 0 : index
    %0 = vector.load %arg0[%c0, %c0_0] : memref<8x2xf32, #tpu.memory_space<vmem>>, vector<8x2xf32>
    %c0_1 = arith.constant 0 : index
    %c0_2 = arith.constant 0 : index
    %1 = vector.load %arg1[%c0_1, %c0_2] : memref<2x128xf32, #tpu.memory_space<vmem>>, vector<2x128xf32>
    %2 = vector.extract_strided_slice %0 {offsets = [0, 0], sizes = [8, 1], strides = [1, 1]} : vector<8x2xf32> to vector<8x1xf32>
    %3 = vector.extract_strided_slice %1 {offsets = [0, 0], sizes = [1, 128], strides = [1, 1]} : vector<2x128xf32> to vector<1x128xf32>
    %4 = vector.broadcast %2 : vector<8x1xf32> to vector<8x128xf32>
    %5 = vector.broadcast %3 : vector<1x128xf32> to vector<8x128xf32>
    %6 = arith.mulf %4, %5 : vector<8x128xf32>
    %7 = vector.extract_strided_slice %0 {offsets = [0, 1], sizes = [8, 1], strides = [1, 1]} : vector<8x2xf32> to vector<8x1xf32>
    %8 = vector.extract_strided_slice %1 {offsets = [1, 0], sizes = [1, 128], strides = [1, 1]} : vector<2x128xf32> to vector<1x128xf32>
    %9 = vector.broadcast %7 : vector<8x1xf32> to vector<8x128xf32>
    %10 = vector.broadcast %8 : vector<1x128xf32> to vector<8x128xf32>
    %11 = arith.mulf %9, %10 : vector<8x128xf32>
    %12 = arith.addf %6, %11 : vector<8x128xf32>
    %c0_3 = arith.constant 0 : index
    %c0_4 = arith.constant 0 : index
    %13 = vector.load %arg2[%c0_3, %c0_4] : memref<1x128xf32, #tpu.memory_space<vmem>>, vector<1x128xf32>
    %14 = vector.broadcast %13 : vector<1x128xf32> to vector<8x128xf32>
    %15 = arith.addf %12, %14 : vector<8x128xf32>
    %cst = arith.constant 0.000000e+00 : f32
    %16 = vector.broadcast %cst : f32 to vector<8x128xf32>
    %17 = arith.maximumf %15, %16 : vector<8x128xf32>
    %c0_5 = arith.constant 0 : index
    %c0_6 = arith.constant 0 : index
    %18 = vector.load %arg3[%c0_5, %c0_6] : memref<128x3xf32, #tpu.memory_space<vmem>>, vector<128x3xf32>
    %cst_7 = arith.constant dense<0.000000e+00> : vector<8x3xf32>
    %19 = tpu.matmul %17, %18, %cst_7 {dimension_numbers = #tpu.dot_dimension_numbers<[1], [0], [0], [1], [0, 0, 1, 1], [], []>} : vector<8x128xf32>, vector<128x3xf32>, vector<8x3xf32> -> vector<8x3xf32>
    %c0_8 = arith.constant 0 : index
    %c0_9 = arith.constant 0 : index
    %20 = vector.load %arg4[%c0_8, %c0_9] : memref<1x3xf32, #tpu.memory_space<vmem>>, vector<1x3xf32>
    %21 = vector.broadcast %20 : vector<1x3xf32> to vector<8x3xf32>
    %22 = arith.addf %19, %21 : vector<8x3xf32>
    %cst_10 = arith.constant 0.000000e+00 : f32
    %23 = vector.broadcast %cst_10 : f32 to vector<8x3xf32>
    %24 = arith.subf %23, %22 : vector<8x3xf32>
    %25 = math.exp %24 : vector<8x3xf32>
    %cst_11 = arith.constant 1.000000e+00 : f32
    %26 = vector.broadcast %cst_11 : f32 to vector<8x3xf32>
    %27 = arith.addf %26, %25 : vector<8x3xf32>
    %28 = tpu.reciprocal %27 {approx = true} : vector<8x3xf32> -> vector<8x3xf32>
    %c0_12 = arith.constant 0 : index
    %c0_13 = arith.constant 0 : index
    %29 = vector.load %arg5[%c0_12, %c0_13] : memref<8x3xf32, #tpu.memory_space<vmem>>, vector<8x3xf32>
    tpu.vector_store %arg5[%c0_12, %c0_13], %28 {strides = array<i32>} : memref<8x3xf32, #tpu.memory_space<vmem>>, vector<8x3xf32>,
    return
  }
}

</mosaic_0001>

<bundles_post_ra>
// kernel: tpu_custom_call.1
= control target key start
LH: loop header
LB: loop body
LE: loop exit
PB: predicated region body
PF: predicated region fallthrough
CT: control target
= control target key end

     0   :  { %v103_v0 = vmov 0   ;;  %v104_v8 = vmov 1   ;;  %vm87_vm0 = vcmask 23552   ;;  %s198_s0 = inlined_call_operand.vmem [shape: f32[8,2], index: 0, kind: input, shape index: {}]   ;;  %s199_s3 = inlined_call_operand.vmem [shape: f32[128,3], index: 3, kind: input, shape index: {}]   ;;  %s200_s2 = inlined_call_operand.vmem [shape: f32[1,128], index: 2, kind: input, shape index: {}]   ;;  %s201_s4 = inlined_call_operand.vmem [shape: f32[1,3], index: 4, kind: input, shape index: {}]   ;;  %s202_s1 = inlined_call_operand.vmem [shape: f32[2,128], index: 1, kind: input, shape index: {}]   ;;  %s203_s5 = inlined_call_operand.vmem [shape: f32[8,3], index: 5, kind: output, shape index: {}]  }
   0x1   :  { %95 = vset.pattern.permute.xlu0 %v103_v0  ;;  %v20_v1 = vld [vmem:[%s198_s0] sm:$0xff]  ;;  %v57_v2 = vld [vmem:[%s199_s3 + $0x78] sm:$0xff]  ;;  %v56_v3 = vld [vmem:[%s199_s3 + $0x70] sm:$0xff] }
   0x2   :  { %24 = vperm.xlu0 %95, %v20_v1   ;;  %62 = vmatpush.msra.mxu0 %v57_v2  ;;  %v55_v4 = vld [vmem:[%s199_s3 + $0x68] sm:$0xff]  ;;  %v54_v5 = vld [vmem:[%s199_s3 + $0x60] sm:$0xff]  ;;  %v53_v6 = vld [vmem:[%s199_s3 + $0x58] sm:$0xff] }
   0x3   :  { %v52_v7 = vld [vmem:[%s199_s3 + $0x50] sm:$0xff]  ;;  %v51_v9 = vld [vmem:[%s199_s3 + $0x48] sm:$0xff]  ;;  %v50_v10 = vld [vmem:[%s199_s3 + $0x40] sm:$0xff] }
   0x4   :  { %63 = vmatpush.msra.mxu0 %v56_v3  ;;  %v49_v11 = vld [vmem:[%s199_s3 + $0x38] sm:$0xff]  ;;  %v48_v12 = vld [vmem:[%s199_s3 + $0x30] sm:$0xff]  ;;  %v47_v13 = vld [vmem:[%s199_s3 + $0x28] sm:$0xff] }
   0x5   :  { %v46_v14 = vld [vmem:[%s199_s3 + $0x20] sm:$0xff]  ;;  %v45_v15 = vld [vmem:[%s199_s3 + $0x18] sm:$0xff]  ;;  %v44_v16 = vld [vmem:[%s199_s3 + $0x10] sm:$0xff] }
   0x6   :  { %64 = vmatpush.msra.mxu0 %v55_v4  ;;  %v43_v17 = vld [vmem:[%s199_s3 + $0x8] sm:$0xff]  ;;  %v42_v18 = vld [vmem:[%s199_s3] sm:$0xff] }
   0x7   :  { %v21_v20 = vld [vmem:[%s202_s1] sm:$0x3] }
   0x8   :  { %65 = vmatpush.msra.mxu0 %v54_v5  ;;  %v27_v21 = vperm.slane %v21_v20, 0  ;;  %v33_v22 = vperm.slane %v21_v20, 1  ;;  %v97_v26 = vld [vmem:[%s200_s2] ss:$0 sm:$0xff] }
   0x9   :  { %v98_v30 = vld [vmem:[%s201_s4] ss:$0 sm:$0xff] }
   0xa   :  { %96 = vset.pattern.permute.xlu0 %v104_v8  ;;  %66 = vmatpush.msra.mxu0 %v53_v6 }
   0xb   :  { %30 = vperm.xlu0 %96, %v20_v1  }
   0xc   :  { %67 = vmatpush.msra.mxu0 %v52_v7 }
   0xe   :  { %68 = vmatpush.msra.mxu0 %v51_v9 }
  0x10   :  { %69 = vmatpush.msra.mxu0 %v50_v10 }
  0x12   :  { %70 = vmatpush.msra.mxu0 %v49_v11 }
  0x14   :  { %71 = vmatpush.msra.mxu0 %v48_v12 }
  0x16   :  { %72 = vmatpush.msra.mxu0 %v47_v13 }
  0x18   :  { %73 = vmatpush.msra.mxu0 %v46_v14 }
  0x1a   :  { %74 = vmatpush.msra.mxu0 %v45_v15 }
  0x1c   :  { %75 = vmatpush.msra.mxu0 %v44_v16 }
  0x1e   :  { %76 = vmatpush.msra.mxu0 %v43_v17 }
  0x20   :  { %77 = vmatpush.msra.mxu0 %v42_v18 }
  0x74   :  { %v25_v19 = vpop.permute.xlu0 %24 }
  0x75   :  { %v28_v24 = vmul.f32 %v27_v21, %v25_v19 }
  0x7d   :  { %v31_v23 = vpop.permute.xlu0 %30 }
  0x7e   :  { %v34_v25 = vmul.f32 %v33_v22, %v31_v23 }
  0x80   :  { %v35_v27 = vadd.f32 %v34_v25, %v28_v24 }
  0x82   :  { %v40_v28 = vadd.f32 %v97_v26, %v35_v27 }
  0x84   :  { %v41_v29 = vmax.f32 %v40_v28, 0.0 }
  0x86   :  { %78 = vmatmul.f32.vlgmr.msra.gmra.mxu0 %v41_v29 }
 0x103   :  { %v79_v31 = vpop.f32.mrf.mxu0 }
 0x104   :  { %v80_v32 = vadd.f32 %v98_v30, %v79_v31 }
 0x106   :  { %v82_v33 = vsub.f32 0.0, %v80_v32 }
 0x108   :  { %v83_v34 = vmul.f32 1.442695, %v82_v33 }
 0x10a   :  { %99 = vpow2.f32 %v83_v34 }
 0x110   :  { %v100_v35 = vpop.eup %99 }
 0x111   :  { %v85_v36 = vadd.f32 1.0, %v100_v35 }
 0x113   :  { %101 = vrcp.f32 %v85_v36 }
 0x119   :  { %v102_v37 = vpop.eup %101 }
 0x11a   :  { %88 = vst.msk [vmem:[%s203_s5] sm:$0xff] %vm87_vm0, %v102_v37 }

</bundles_post_ra>
